<compile_context>
chip_gen: v7x
topology: tpu7x:2x2x1
jax: 0.10.0
libtpu: 0.0.40
codegen_flags: <defaults>
</compile_context>

<pallas_src>
import math
import numpy as np
import jax
import jax.numpy as jnp
from jax.experimental import pallas as pl
from jax.experimental.pallas import tpu as pltpu

# ---------------- config (small, consistent with LlamaConfig semantics) -----
B, S, H = 2, 8, 32          # batch, seq, hidden_size
T = B * S                   # flattened token count
NH, NKV = 4, 2              # num_attention_heads, num_key_value_heads
D = H // NH                 # head_dim = 8
D2 = D // 2
GROUP = NH // NKV
INTER = 64                  # intermediate_size
EPS = 1e-5                  # rms_norm_eps
SCALE = 1.0 / math.sqrt(D)  # qk_scale
NEG = -1e9                  # additive causal mask value

QW = NH * D                 # query width  = 32
KW = NKV * D                # kv width     = 16
K0 = QW                     # lane offset of K in fused qkv output
V0 = QW + KW                # lane offset of V
QR0 = QW + 2 * KW           # lane offset of rot_half(Q) columns
KR0 = QR0 + QW              # lane offset of rot_half(K) columns
QKV_EXT_W = KR0 + KW        # fused (q,k,v,rot_half(q),rot_half(k)) width = 112
CS_W = 2 * (QW + KW)        # packed cos/sin input width = 96


# ---------------- fused decoder-layer kernel (one batch per grid step) ------

def _decoder_layer_kernel(x_ref, cs_ref, ln_in_ref, wqkv_ref, wo_ref,
                          ln_post_ref, wgu_ref, wd_ref,
                          out_ref, kv_ref):
    x = x_ref[...]                                            # (S, H) f32

    # ---- input RMSNorm ------------------------------------------------------
    var = jnp.mean(x * x, axis=-1, keepdims=True)
    h = x * jax.lax.rsqrt(var + EPS) * ln_in_ref[...]

    # ---- fused QKV (+ rotate-half columns) projection: one MXU pass ---------
    qkv = jnp.dot(h, wqkv_ref[...], preferred_element_type=jnp.float32)  # (S,112)

    cs = cs_ref[...]                                          # (S, 96)
    cos_q, sin_q = cs[:, :QW], cs[:, QW:2 * QW]
    cos_k, sin_k = cs[:, 2 * QW:2 * QW + KW], cs[:, 2 * QW + KW:]

    # ---- RoPE: full-vreg VPU FMAs (rotate-half pre-folded into the weight) --
    q_rot = qkv[:, :QW] * cos_q + qkv[:, QR0:QR0 + QW] * sin_q   # (S, 32)
    k_rot = qkv[:, K0:V0] * cos_k + qkv[:, KR0:] * sin_k         # (S, 16)
    v = qkv[:, V0:QR0]                                           # (S, 16)

    # single lane-dense KV-cache output write
    kv_ref[...] = jnp.concatenate([k_rot, v], axis=-1).astype(kv_ref.dtype)

    # ---- causal mask: per-batch (S, S), generated in-kernel -----------------
    row = jax.lax.broadcasted_iota(jnp.int32, (S, S), 0)
    col = jax.lax.broadcasted_iota(jnp.int32, (S, S), 1)
    mask = jnp.where(row >= col, 0.0, NEG)

    # ---- GQA attention (SSA values only; NH is tiny here) -------------------
    # TODO(synk): at real NH/S give heads (and KV-token blocks) grid axes
    # instead of a fully unrolled Python loop.
    heads = []
    for hd in range(NH):
        g = hd // GROUP
        q_h = q_rot[:, hd * D:(hd + 1) * D]                   # (S, D)
        k_g = k_rot[:, g * D:(g + 1) * D]                     # (S, D)
        v_g = v[:, g * D:(g + 1) * D]                         # (S, D)
        s = jax.lax.dot_general(
            q_h, k_g, (((1,), (1,)), ((), ())),
            preferred_element_type=jnp.float32) * SCALE + mask
        s = s - jnp.max(s, axis=-1, keepdims=True)
        p = jnp.exp(s)
        p = p / jnp.sum(p, axis=-1, keepdims=True)            # exact softmax
        heads.append(jnp.dot(p, v_g, preferred_element_type=jnp.float32))
    attn = jnp.concatenate(heads, axis=-1)                    # (S, NH*D)

    # ---- o_proj + residual ---------------------------------------------------
    s1 = x + jnp.dot(attn, wo_ref[...], preferred_element_type=jnp.float32)

    # ---- post RMSNorm + fused gate/up (128-lane) + SwiGLU + down + residual --
    var2 = jnp.mean(s1 * s1, axis=-1, keepdims=True)
    h2 = s1 * jax.lax.rsqrt(var2 + EPS) * ln_post_ref[...]
    gu = jnp.dot(h2, wgu_ref[...], preferred_element_type=jnp.float32)   # (S,128)
    gate, up = gu[:, :INTER], gu[:, INTER:]
    act = gate * jax.nn.sigmoid(gate) * up
    down = jnp.dot(act, wd_ref[...], preferred_element_type=jnp.float32)
    out_ref[...] = (s1 + down).astype(out_ref.dtype)


# ---------------- llama3 rope scaling (parameter setup glue, plain numpy) ---

def llama3_inv_freq(dim, base=500000.0, factor=8.0, low_freq_factor=1.0,
                    high_freq_factor=4.0, old_context_len=8192):
    inv_freq = 1.0 / (base ** (np.arange(0, dim, 2, dtype=np.float32) / dim))
    low_wl = old_context_len / low_freq_factor
    high_wl = old_context_len / high_freq_factor
    wavelen = 2.0 * np.pi / inv_freq
    smooth = (old_context_len / wavelen - low_freq_factor) / (
        high_freq_factor - low_freq_factor)
    scaled = (1.0 - smooth) * inv_freq / factor + smooth * inv_freq
    new = np.where(wavelen < high_wl, inv_freq,
                   np.where(wavelen > low_wl, inv_freq / factor, scaled))
    return jnp.asarray(new, dtype=jnp.float32)


def rope_cos_sin(position_ids, inv_freq):
    # freqs: (B, S, D2); emb = cat(freqs, freqs) -> cos/sin: (B, S, D)
    freqs = position_ids[:, :, None].astype(jnp.float32) * inv_freq[None, None, :]
    emb = jnp.concatenate([freqs, freqs], axis=-1)
    return jnp.cos(emb), jnp.sin(emb)


def _rot_half_matrix(width):
    """Signed permutation R with (x @ R) == rotate_half(x) per D-wide head."""
    a = np.arange(width)[:, None]
    b = np.arange(width)[None, :]
    same = (a // D) == (b // D)
    m = (np.where(same & (b == a + D2), 1.0, 0.0)
         + np.where(same & (b == a - D2), -1.0, 0.0))
    return jnp.asarray(m, dtype=jnp.float32)


_RQ = _rot_half_matrix(QW)
_RK = _rot_half_matrix(KW)


# ---------------- decoder layer forward (single fused pallas_call) ----------

def decoder_layer_forward(hidden_states, position_ids, params):
    # TODO(synk): tensor/sequence-parallel collectives and past_key_value
    # (decode) cache append are not implemented; this is the tp_degree=1
    # prefill path (new K/V returned as present_key_value).
    x2d = hidden_states.reshape(T, H)

    cos, sin = rope_cos_sin(position_ids, params["inv_freq"])     # (B, S, D)
    # pre-expand cos/sin across heads, pack into one lane-aligned input
    cos_q = jnp.tile(cos, (1, 1, NH)).reshape(T, QW)
    sin_q = jnp.tile(sin, (1, 1, NH)).reshape(T, QW)
    cos_k = jnp.tile(cos, (1, 1, NKV)).reshape(T, KW)
    sin_k = jnp.tile(sin, (1, 1, NKV)).reshape(T, KW)
    cs = jnp.concatenate([cos_q, sin_q, cos_k, sin_k], axis=-1)   # (T, 96)

    # fold rotate-half into the fused projection weight (exact signed perm)
    wqkv = params["wqkv"]
    wq = wqkv[:, :QW]
    wk = wqkv[:, QW:QW + KW]
    wqkv_ext = jnp.concatenate([wqkv, wq @ _RQ, wk @ _RK], axis=-1)  # (H, 112)

    out2d, kv2d = pl.pallas_call(
        _decoder_layer_kernel,
        out_shape=(
            jax.ShapeDtypeStruct((T, H), hidden_states.dtype),        # layer out
            jax.ShapeDtypeStruct((T, 2 * KW), hidden_states.dtype),   # [K_rot | V]
        ),
        grid_spec=pltpu.PrefetchScalarGridSpec(
            num_scalar_prefetch=0,
            grid=(B,),
            in_specs=[
                pl.BlockSpec((S, H), lambda b: (b, 0)),               # x tokens
                pl.BlockSpec((S, CS_W), lambda b: (b, 0)),            # cos/sin
                pl.BlockSpec((1, H), lambda b: (0, 0)),               # ln_in
                pl.BlockSpec((H, QKV_EXT_W), lambda b: (0, 0)),       # wqkv_ext
                pl.BlockSpec((H, H), lambda b: (0, 0)),               # wo
                pl.BlockSpec((1, H), lambda b: (0, 0)),               # ln_post
                pl.BlockSpec((H, 2 * INTER), lambda b: (0, 0)),       # gate_up
                pl.BlockSpec((INTER, H), lambda b: (0, 0)),           # down
            ],
            out_specs=(
                pl.BlockSpec((S, H), lambda b: (b, 0)),
                pl.BlockSpec((S, 2 * KW), lambda b: (b, 0)),
            ),
        ),
        compiler_params=pltpu.CompilerParams(
            dimension_semantics=("parallel",)),
    )(x2d, cs, params["ln_in"], wqkv_ext, params["wo"],
      params["ln_post"], params["wgu"], params["wd"])

    out = out2d.reshape(B, S, H)
    # present_key_value kept token-major [B, S, n_kv_heads, head_dim]
    k2d = kv2d[:, :KW]
    v2d = kv2d[:, KW:]
    present_key_value = (k2d.reshape(B, S, NKV, D), v2d.reshape(B, S, NKV, D))
    return out, present_key_value, cos, sin


# ---------------- pure-JAX reference -----------------------------------------

def reference_forward(hidden_states, position_ids, params):
    def rms(x, w):
        var = jnp.mean(x.astype(jnp.float32) ** 2, -1, keepdims=True)
        return x * jax.lax.rsqrt(var + EPS) * w[0]

    def rot_half(x):
        return jnp.concatenate([-x[..., D2:], x[..., :D2]], axis=-1)

    wq = params["wqkv"][:, :QW]
    wk = params["wqkv"][:, QW:QW + KW]
    wv = params["wqkv"][:, QW + KW:]
    wg = params["wgu"][:, :INTER]
    wu = params["wgu"][:, INTER:]

    x = hidden_states
    residual = x
    h = rms(x, params["ln_in"])
    q = (h @ wq).reshape(B, S, NH, D).transpose(0, 2, 1, 3)
    k = (h @ wk).reshape(B, S, NKV, D).transpose(0, 2, 1, 3)
    v = (h @ wv).reshape(B, S, NKV, D).transpose(0, 2, 1, 3)

    cos, sin = rope_cos_sin(position_ids, params["inv_freq"])
    cos_b = cos[:, None, :, :]
    sin_b = sin[:, None, :, :]
    q = q * cos_b + rot_half(q) * sin_b
    k = k * cos_b + rot_half(k) * sin_b
    k_rot = k                                   # (B, NKV, S, D) cache K
    v_cache = v                                 # (B, NKV, S, D) cache V

    kr = jnp.repeat(k, GROUP, axis=1)
    vr = jnp.repeat(v, GROUP, axis=1)

    causal = jnp.where(jnp.arange(S)[:, None] >= jnp.arange(S)[None, :], 0.0, NEG)
    scores = jnp.einsum("bhqd,bhkd->bhqk", q, kr) * SCALE + causal[None, None]
    p = jax.nn.softmax(scores, axis=-1)
    attn = jnp.einsum("bhqk,bhkd->bhqd", p, vr).transpose(0, 2, 1, 3).reshape(B, S, H)
    attn = attn @ params["wo"]

    h = residual + attn
    residual = h
    h = rms(h, params["ln_post"])
    g = h @ wg
    u = h @ wu
    mlp = (g * jax.nn.sigmoid(g) * u) @ params["wd"]
    return residual + mlp, k_rot, v_cache


# ---------------- main --------------------------------------------------------

if __name__ == "__main__":
    key = jax.random.PRNGKey(0)
    ks = jax.random.split(key, 7)
    std = 0.05
    params = {
        "wqkv": jax.random.normal(ks[0], (H, QW + 2 * KW), jnp.float32) * std,
        "wo": jax.random.normal(ks[1], (H, H), jnp.float32) * std,
        "wgu": jax.random.normal(ks[2], (H, 2 * INTER), jnp.float32) * std,
        "wd": jax.random.normal(ks[3], (INTER, H), jnp.float32) * std,
        "ln_in": 1.0 + 0.1 * jax.random.normal(ks[4], (1, H), jnp.float32),
        "ln_post": 1.0 + 0.1 * jax.random.normal(ks[5], (1, H), jnp.float32),
        "inv_freq": llama3_inv_freq(D),
    }

    hidden_states = jax.random.normal(ks[6], (B, S, H), jnp.float32)
    position_ids = jnp.broadcast_to(jnp.arange(S, dtype=jnp.int32)[None, :], (B, S))

    out, present_kv, cos_cache, sin_cache = decoder_layer_forward(
        hidden_states, position_ids, params)
    out = jax.block_until_ready(out)

    ref_out, ref_krot, ref_v = reference_forward(hidden_states, position_ids, params)

    np_out = np.asarray(out)
    np_ref = np.asarray(ref_out)
    assert np_out.shape == (B, S, H)
    assert np.allclose(np_out, np_ref, atol=1e-3, rtol=1e-3), (
        f"max abs diff {np.max(np.abs(np_out - np_ref))}")

    # KV-cache outputs: kernel emits token-major [B, S, NKV, D]
    np_k = np.transpose(np.asarray(present_kv[0]), (0, 2, 1, 3))
    np_v = np.transpose(np.asarray(present_kv[1]), (0, 2, 1, 3))
    assert np.allclose(np_k, np.asarray(ref_krot), atol=1e-3, rtol=1e-3), (
        f"k_rot max abs diff {np.max(np.abs(np_k - np.asarray(ref_krot)))}")
    assert np.allclose(np_v, np.asarray(ref_v), atol=1e-3, rtol=1e-3), (
        f"v max abs diff {np.max(np.abs(np_v - np.asarray(ref_v)))}")

    assert cos_cache.shape == (B, S, D) and sin_cache.shape == (B, S, D)

    print("KERNEL_OK")
</pallas_src>

<mosaic_0001>
module attributes {stable_mosaic.version = 11 : i64} {
  func.func @_decoder_layer_kernel(%arg0: i32, %arg1: memref<8x32xf32, #tpu.memory_space<vmem>>, %arg2: memref<8x96xf32, #tpu.memory_space<vmem>>, %arg3: memref<1x32xf32, #tpu.memory_space<vmem>>, %arg4: memref<32x112xf32, #tpu.memory_space<vmem>>, %arg5: memref<32x32xf32, #tpu.memory_space<vmem>>, %arg6: memref<1x32xf32, #tpu.memory_space<vmem>>, %arg7: memref<32x128xf32, #tpu.memory_space<vmem>>, %arg8: memref<64x32xf32, #tpu.memory_space<vmem>>, %arg9: memref<8x32xf32, #tpu.memory_space<vmem>>, %arg10: memref<8x32xf32, #tpu.memory_space<vmem>>) attributes {dimension_semantics = [#tpu.dimension_semantics<parallel>], iteration_bounds = array<i64: 2>, scalar_prefetch = 0 : i64, scratch_operands = 0 : i64, tpu.core_type = #tpu.core_type<tc>, window_params = [{transform_indices = @transform_0, window_bounds = array<i64: 8, 32>}, {transform_indices = @transform_1, window_bounds = array<i64: 8, 96>}, {pipeline_mode = #tpu.pipeline_mode<synchronous>, transform_indices = @transform_2, window_bounds = array<i64: 1, 32>}, {pipeline_mode = #tpu.pipeline_mode<synchronous>, transform_indices = @transform_3, window_bounds = array<i64: 32, 112>}, {pipeline_mode = #tpu.pipeline_mode<synchronous>, transform_indices = @transform_4, window_bounds = array<i64: 32, 32>}, {pipeline_mode = #tpu.pipeline_mode<synchronous>, transform_indices = @transform_5, window_bounds = array<i64: 1, 32>}, {pipeline_mode = #tpu.pipeline_mode<synchronous>, transform_indices = @transform_6, window_bounds = array<i64: 32, 128>}, {pipeline_mode = #tpu.pipeline_mode<synchronous>, transform_indices = @transform_7, window_bounds = array<i64: 64, 32>}, {transform_indices = @transform_8, window_bounds = array<i64: 8, 32>}, {transform_indices = @transform_9, window_bounds = array<i64: 8, 32>}]} {
    %c0 = arith.constant 0 : index
    %c0_0 = arith.constant 0 : index
    %0 = vector.load %arg1[%c0, %c0_0] : memref<8x32xf32, #tpu.memory_space<vmem>>, vector<8x32xf32>
    %1 = arith.mulf %0, %0 : vector<8x32xf32>
    %cst = arith.constant dense<0.000000e+00> : vector<8xf32>
    %2 = vector.multi_reduction <add>, %1, %cst [1] : vector<8x32xf32> to vector<8xf32>
    %3 = vector.shape_cast %2 : vector<8xf32> to vector<8x1xf32>
    %cst_1 = arith.constant 3.200000e+01 : f32
    %4 = vector.broadcast %cst_1 : f32 to vector<8x1xf32>
    %5 = arith.divf %3, %4 : vector<8x1xf32>
    %cst_2 = arith.constant 9.99999974E-6 : f32
    %6 = vector.broadcast %cst_2 : f32 to vector<8x1xf32>
    %7 = arith.addf %5, %6 : vector<8x1xf32>
    %8 = math.rsqrt %7 : vector<8x1xf32>
    %9 = vector.broadcast %8 : vector<8x1xf32> to vector<8x32xf32>
    %10 = arith.mulf %0, %9 : vector<8x32xf32>
    %c0_3 = arith.constant 0 : index
    %c0_4 = arith.constant 0 : index
    %11 = vector.load %arg3[%c0_3, %c0_4] : memref<1x32xf32, #tpu.memory_space<vmem>>, vector<1x32xf32>
    %12 = vector.broadcast %11 : vector<1x32xf32> to vector<8x32xf32>
    %13 = arith.mulf %10, %12 : vector<8x32xf32>
    %c0_5 = arith.constant 0 : index
    %c0_6 = arith.constant 0 : index
    %14 = vector.load %arg4[%c0_5, %c0_6] : memref<32x112xf32, #tpu.memory_space<vmem>>, vector<32x112xf32>
    %cst_7 = arith.constant dense<0.000000e+00> : vector<8x112xf32>
    %15 = tpu.matmul %13, %14, %cst_7 {dimension_numbers = #tpu.dot_dimension_numbers<[1], [0], [0], [1], [0, 0, 1, 1], [], []>} : vector<8x32xf32>, vector<32x112xf32>, vector<8x112xf32> -> vector<8x112xf32>
    %c0_8 = arith.constant 0 : index
    %c0_9 = arith.constant 0 : index
    %16 = vector.load %arg2[%c0_8, %c0_9] : memref<8x96xf32, #tpu.memory_space<vmem>>, vector<8x96xf32>
    %17 = vector.extract_strided_slice %16 {offsets = [0, 0], sizes = [8, 32], strides = [1, 1]} : vector<8x96xf32> to vector<8x32xf32>
    %18 = vector.extract_strided_slice %16 {offsets = [0, 32], sizes = [8, 32], strides = [1, 1]} : vector<8x96xf32> to vector<8x32xf32>
    %19 = vector.extract_strided_slice %16 {offsets = [0, 64], sizes = [8, 16], strides = [1, 1]} : vector<8x96xf32> to vector<8x16xf32>
    %20 = vector.extract_strided_slice %16 {offsets = [0, 80], sizes = [8, 16], strides = [1, 1]} : vector<8x96xf32> to vector<8x16xf32>
    %21 = vector.extract_strided_slice %15 {offsets = [0, 0], sizes = [8, 32], strides = [1, 1]} : vector<8x112xf32> to vector<8x32xf32>
    %22 = arith.mulf %21, %17 : vector<8x32xf32>
    %23 = vector.extract_strided_slice %15 {offsets = [0, 64], sizes = [8, 32], strides = [1, 1]} : vector<8x112xf32> to vector<8x32xf32>
    %24 = arith.mulf %23, %18 : vector<8x32xf32>
    %25 = arith.addf %22, %24 : vector<8x32xf32>
    %26 = vector.extract_strided_slice %15 {offsets = [0, 32], sizes = [8, 16], strides = [1, 1]} : vector<8x112xf32> to vector<8x16xf32>
    %27 = arith.mulf %26, %19 : vector<8x16xf32>
    %28 = vector.extract_strided_slice %15 {offsets = [0, 96], sizes = [8, 16], strides = [1, 1]} : vector<8x112xf32> to vector<8x16xf32>
    %29 = arith.mulf %28, %20 : vector<8x16xf32>
    %30 = arith.addf %27, %29 : vector<8x16xf32>
    %31 = vector.extract_strided_slice %15 {offsets = [0, 48], sizes = [8, 16], strides = [1, 1]} : vector<8x112xf32> to vector<8x16xf32>
    %32 = tpu.concatenate %30, %31 in 1 : vector<8x16xf32>, vector<8x16xf32> -> vector<8x32xf32>
    %c0_10 = arith.constant 0 : index
    %c0_11 = arith.constant 0 : index
    %33 = vector.load %arg10[%c0_10, %c0_11] : memref<8x32xf32, #tpu.memory_space<vmem>>, vector<8x32xf32>
    tpu.vector_store %arg10[%c0_10, %c0_11], %32 {strides = array<i32>} : memref<8x32xf32, #tpu.memory_space<vmem>>, vector<8x32xf32>,
    %34 = tpu.iota {dimensions = array<i32: 0>} : vector<8x8xi32>
    %35 = tpu.iota {dimensions = array<i32: 1>} : vector<8x8xi32>
    %36 = arith.cmpi sge, %34, %35 : vector<8x8xi32>
    %cst_12 = arith.constant 0.000000e+00 : f32
    %cst_13 = arith.constant -1.000000e+09 : f32
    %37 = vector.broadcast %cst_12 : f32 to vector<8x8xf32>
    %38 = vector.broadcast %cst_13 : f32 to vector<8x8xf32>
    %39 = arith.select %36, %37, %38 : vector<8x8xi1>, vector<8x8xf32>
    %40 = vector.extract_strided_slice %25 {offsets = [0, 0], sizes = [8, 8], strides = [1, 1]} : vector<8x32xf32> to vector<8x8xf32>
    %41 = vector.extract_strided_slice %30 {offsets = [0, 0], sizes = [8, 8], strides = [1, 1]} : vector<8x16xf32> to vector<8x8xf32>
    %42 = vector.extract_strided_slice %31 {offsets = [0, 0], sizes = [8, 8], strides = [1, 1]} : vector<8x16xf32> to vector<8x8xf32>
    %cst_14 = arith.constant dense<0.000000e+00> : vector<8x8xf32>
    %43 = tpu.matmul %40, %41, %cst_14 {dimension_numbers = #tpu.dot_dimension_numbers<[1], [1], [0], [0], [0, 0, 1, 0], [], []>} : vector<8x8xf32>, vector<8x8xf32>, vector<8x8xf32> -> vector<8x8xf32>
    %cst_15 = arith.constant 0.353553385 : f32
    %44 = vector.broadcast %cst_15 : f32 to vector<8x8xf32>
    %45 = arith.mulf %43, %44 : vector<8x8xf32>
    %46 = arith.addf %45, %39 : vector<8x8xf32>
    %cst_16 = arith.constant dense<0xFF800000> : vector<8xf32>
    %47 = vector.multi_reduction <maximumf>, %46, %cst_16 [1] : vector<8x8xf32> to vector<8xf32>
    %48 = vector.shape_cast %47 : vector<8xf32> to vector<8x1xf32>
    %49 = vector.broadcast %48 : vector<8x1xf32> to vector<8x8xf32>
    %50 = arith.subf %46, %49 : vector<8x8xf32>
    %51 = math.exp %50 : vector<8x8xf32>
    %cst_17 = arith.constant dense<0.000000e+00> : vector<8xf32>
    %52 = vector.multi_reduction <add>, %51, %cst_17 [1] : vector<8x8xf32> to vector<8xf32>
    %53 = vector.shape_cast %52 : vector<8xf32> to vector<8x1xf32>
    %54 = vector.broadcast %53 : vector<8x1xf32> to vector<8x8xf32>
    %55 = arith.divf %51, %54 : vector<8x8xf32>
    %cst_18 = arith.constant dense<0.000000e+00> : vector<8x8xf32>
    %56 = tpu.matmul %55, %42, %cst_18 {dimension_numbers = #tpu.dot_dimension_numbers<[1], [0], [0], [1], [0, 0, 1, 1], [], []>} : vector<8x8xf32>, vector<8x8xf32>, vector<8x8xf32> -> vector<8x8xf32>
    %57 = vector.extract_strided_slice %25 {offsets = [0, 8], sizes = [8, 8], strides = [1, 1]} : vector<8x32xf32> to vector<8x8xf32>
    %58 = vector.extract_strided_slice %30 {offsets = [0, 0], sizes = [8, 8], strides = [1, 1]} : vector<8x16xf32> to vector<8x8xf32>
    %59 = vector.extract_strided_slice %31 {offsets = [0, 0], sizes = [8, 8], strides = [1, 1]} : vector<8x16xf32> to vector<8x8xf32>
    %cst_19 = arith.constant dense<0.000000e+00> : vector<8x8xf32>
    %60 = tpu.matmul %57, %58, %cst_19 {dimension_numbers = #tpu.dot_dimension_numbers<[1], [1], [0], [0], [0, 0, 1, 0], [], []>} : vector<8x8xf32>, vector<8x8xf32>, vector<8x8xf32> -> vector<8x8xf32>
    %cst_20 = arith.constant 0.353553385 : f32
    %61 = vector.broadcast %cst_20 : f32 to vector<8x8xf32>
    %62 = arith.mulf %60, %61 : vector<8x8xf32>
    %63 = arith.addf %62, %39 : vector<8x8xf32>
    %cst_21 = arith.constant dense<0xFF800000> : vector<8xf32>
    %64 = vector.multi_reduction <maximumf>, %63, %cst_21 [1] : vector<8x8xf32> to vector<8xf32>
    %65 = vector.shape_cast %64 : vector<8xf32> to vector<8x1xf32>
    %66 = vector.broadcast %65 : vector<8x1xf32> to vector<8x8xf32>
    %67 = arith.subf %63, %66 : vector<8x8xf32>
    %68 = math.exp %67 : vector<8x8xf32>
    %cst_22 = arith.constant dense<0.000000e+00> : vector<8xf32>
    %69 = vector.multi_reduction <add>, %68, %cst_22 [1] : vector<8x8xf32> to vector<8xf32>
    %70 = vector.shape_cast %69 : vector<8xf32> to vector<8x1xf32>
    %71 = vector.broadcast %70 : vector<8x1xf32> to vector<8x8xf32>
    %72 = arith.divf %68, %71 : vector<8x8xf32>
    %cst_23 = arith.constant dense<0.000000e+00> : vector<8x8xf32>
    %73 = tpu.matmul %72, %59, %cst_23 {dimension_numbers = #tpu.dot_dimension_numbers<[1], [0], [0], [1], [0, 0, 1, 1], [], []>} : vector<8x8xf32>, vector<8x8xf32>, vector<8x8xf32> -> vector<8x8xf32>
    %74 = vector.extract_strided_slice %25 {offsets = [0, 16], sizes = [8, 8], strides = [1, 1]} : vector<8x32xf32> to vector<8x8xf32>
    %75 = vector.extract_strided_slice %30 {offsets = [0, 8], sizes = [8, 8], strides = [1, 1]} : vector<8x16xf32> to vector<8x8xf32>
    %76 = vector.extract_strided_slice %31 {offsets = [0, 8], sizes = [8, 8], strides = [1, 1]} : vector<8x16xf32> to vector<8x8xf32>
    %cst_24 = arith.constant dense<0.000000e+00> : vector<8x8xf32>
    %77 = tpu.matmul %74, %75, %cst_24 {dimension_numbers = #tpu.dot_dimension_numbers<[1], [1], [0], [0], [0, 0, 1, 0], [], []>} : vector<8x8xf32>, vector<8x8xf32>, vector<8x8xf32> -> vector<8x8xf32>
    %cst_25 = arith.constant 0.353553385 : f32
    %78 = vector.broadcast %cst_25 : f32 to vector<8x8xf32>
    %79 = arith.mulf %77, %78 : vector<8x8xf32>
    %80 = arith.addf %79, %39 : vector<8x8xf32>
    %cst_26 = arith.constant dense<0xFF800000> : vector<8xf32>
    %81 = vector.multi_reduction <maximumf>, %80, %cst_26 [1] : vector<8x8xf32> to vector<8xf32>
    %82 = vector.shape_cast %81 : vector<8xf32> to vector<8x1xf32>
    %83 = vector.broadcast %82 : vector<8x1xf32> to vector<8x8xf32>
    %84 = arith.subf %80, %83 : vector<8x8xf32>
    %85 = math.exp %84 : vector<8x8xf32>
    %cst_27 = arith.constant dense<0.000000e+00> : vector<8xf32>
    %86 = vector.multi_reduction <add>, %85, %cst_27 [1] : vector<8x8xf32> to vector<8xf32>
    %87 = vector.shape_cast %86 : vector<8xf32> to vector<8x1xf32>
    %88 = vector.broadcast %87 : vector<8x1xf32> to vector<8x8xf32>
    %89 = arith.divf %85, %88 : vector<8x8xf32>
    %cst_28 = arith.constant dense<0.000000e+00> : vector<8x8xf32>
    %90 = tpu.matmul %89, %76, %cst_28 {dimension_numbers = #tpu.dot_dimension_numbers<[1], [0], [0], [1], [0, 0, 1, 1], [], []>} : vector<8x8xf32>, vector<8x8xf32>, vector<8x8xf32> -> vector<8x8xf32>
    %91 = vector.extract_strided_slice %25 {offsets = [0, 24], sizes = [8, 8], strides = [1, 1]} : vector<8x32xf32> to vector<8x8xf32>
    %92 = vector.extract_strided_slice %30 {offsets = [0, 8], sizes = [8, 8], strides = [1, 1]} : vector<8x16xf32> to vector<8x8xf32>
    %93 = vector.extract_strided_slice %31 {offsets = [0, 8], sizes = [8, 8], strides = [1, 1]} : vector<8x16xf32> to vector<8x8xf32>
    %cst_29 = arith.constant dense<0.000000e+00> : vector<8x8xf32>
    %94 = tpu.matmul %91, %92, %cst_29 {dimension_numbers = #tpu.dot_dimension_numbers<[1], [1], [0], [0], [0, 0, 1, 0], [], []>} : vector<8x8xf32>, vector<8x8xf32>, vector<8x8xf32> -> vector<8x8xf32>
    %cst_30 = arith.constant 0.353553385 : f32
    %95 = vector.broadcast %cst_30 : f32 to vector<8x8xf32>
    %96 = arith.mulf %94, %95 : vector<8x8xf32>
    %97 = arith.addf %96, %39 : vector<8x8xf32>
    %cst_31 = arith.constant dense<0xFF800000> : vector<8xf32>
    %98 = vector.multi_reduction <maximumf>, %97, %cst_31 [1] : vector<8x8xf32> to vector<8xf32>
    %99 = vector.shape_cast %98 : vector<8xf32> to vector<8x1xf32>
    %100 = vector.broadcast %99 : vector<8x1xf32> to vector<8x8xf32>
    %101 = arith.subf %97, %100 : vector<8x8xf32>
    %102 = math.exp %101 : vector<8x8xf32>
    %cst_32 = arith.constant dense<0.000000e+00> : vector<8xf32>
    %103 = vector.multi_reduction <add>, %102, %cst_32 [1] : vector<8x8xf32> to vector<8xf32>
    %104 = vector.shape_cast %103 : vector<8xf32> to vector<8x1xf32>
    %105 = vector.broadcast %104 : vector<8x1xf32> to vector<8x8xf32>
    %106 = arith.divf %102, %105 : vector<8x8xf32>
    %cst_33 = arith.constant dense<0.000000e+00> : vector<8x8xf32>
    %107 = tpu.matmul %106, %93, %cst_33 {dimension_numbers = #tpu.dot_dimension_numbers<[1], [0], [0], [1], [0, 0, 1, 1], [], []>} : vector<8x8xf32>, vector<8x8xf32>, vector<8x8xf32> -> vector<8x8xf32>
    %108 = tpu.concatenate %56, %73, %90, %107 in 1 : vector<8x8xf32>, vector<8x8xf32>, vector<8x8xf32>, vector<8x8xf32> -> vector<8x32xf32>
    %c0_34 = arith.constant 0 : index
    %c0_35 = arith.constant 0 : index
    %109 = vector.load %arg5[%c0_34, %c0_35] : memref<32x32xf32, #tpu.memory_space<vmem>>, vector<32x32xf32>
    %cst_36 = arith.constant dense<0.000000e+00> : vector<8x32xf32>
    %110 = tpu.matmul %108, %109, %cst_36 {dimension_numbers = #tpu.dot_dimension_numbers<[1], [0], [0], [1], [0, 0, 1, 1], [], []>} : vector<8x32xf32>, vector<32x32xf32>, vector<8x32xf32> -> vector<8x32xf32>
    %111 = arith.addf %0, %110 : vector<8x32xf32>
    %112 = arith.mulf %111, %111 : vector<8x32xf32>
    %cst_37 = arith.constant dense<0.000000e+00> : vector<8xf32>
    %113 = vector.multi_reduction <add>, %112, %cst_37 [1] : vector<8x32xf32> to vector<8xf32>
    %114 = vector.shape_cast %113 : vector<8xf32> to vector<8x1xf32>
    %cst_38 = arith.constant 3.200000e+01 : f32
    %115 = vector.broadcast %cst_38 : f32 to vector<8x1xf32>
    %116 = arith.divf %114, %115 : vector<8x1xf32>
    %cst_39 = arith.constant 9.99999974E-6 : f32
    %117 = vector.broadcast %cst_39 : f32 to vector<8x1xf32>
    %118 = arith.addf %116, %117 : vector<8x1xf32>
    %119 = math.rsqrt %118 : vector<8x1xf32>
    %120 = vector.broadcast %119 : vector<8x1xf32> to vector<8x32xf32>
    %121 = arith.mulf %111, %120 : vector<8x32xf32>
    %c0_40 = arith.constant 0 : index
    %c0_41 = arith.constant 0 : index
    %122 = vector.load %arg6[%c0_40, %c0_41] : memref<1x32xf32, #tpu.memory_space<vmem>>, vector<1x32xf32>
    %123 = vector.broadcast %122 : vector<1x32xf32> to vector<8x32xf32>
    %124 = arith.mulf %121, %123 : vector<8x32xf32>
    %c0_42 = arith.constant 0 : index
    %c0_43 = arith.constant 0 : index
    %125 = vector.load %arg7[%c0_42, %c0_43] : memref<32x128xf32, #tpu.memory_space<vmem>>, vector<32x128xf32>
    %cst_44 = arith.constant dense<0.000000e+00> : vector<8x128xf32>
    %126 = tpu.matmul %124, %125, %cst_44 {dimension_numbers = #tpu.dot_dimension_numbers<[1], [0], [0], [1], [0, 0, 1, 1], [], []>} : vector<8x32xf32>, vector<32x128xf32>, vector<8x128xf32> -> vector<8x128xf32>
    %127 = vector.extract_strided_slice %126 {offsets = [0, 0], sizes = [8, 64], strides = [1, 1]} : vector<8x128xf32> to vector<8x64xf32>
    %128 = vector.extract_strided_slice %126 {offsets = [0, 64], sizes = [8, 64], strides = [1, 1]} : vector<8x128xf32> to vector<8x64xf32>
    %129 = arith.negf %127 : vector<8x64xf32>
    %130 = math.exp %129 : vector<8x64xf32>
    %cst_45 = arith.constant 1.000000e+00 : f32
    %131 = vector.broadcast %cst_45 : f32 to vector<8x64xf32>
    %132 = arith.addf %131, %130 : vector<8x64xf32>
    %133 = arith.divf %131, %132 : vector<8x64xf32>
    %134 = arith.mulf %127, %133 : vector<8x64xf32>
    %135 = arith.mulf %134, %128 : vector<8x64xf32>
    %c0_46 = arith.constant 0 : index
    %c0_47 = arith.constant 0 : index
    %136 = vector.load %arg8[%c0_46, %c0_47] : memref<64x32xf32, #tpu.memory_space<vmem>>, vector<64x32xf32>
    %cst_48 = arith.constant dense<0.000000e+00> : vector<8x32xf32>
    %137 = tpu.matmul %135, %136, %cst_48 {dimension_numbers = #tpu.dot_dimension_numbers<[1], [0], [0], [1], [0, 0, 1, 1], [], []>} : vector<8x64xf32>, vector<64x32xf32>, vector<8x32xf32> -> vector<8x32xf32>
    %138 = arith.addf %111, %137 : vector<8x32xf32>
    %c0_49 = arith.constant 0 : index
    %c0_50 = arith.constant 0 : index
    %139 = vector.load %arg9[%c0_49, %c0_50] : memref<8x32xf32, #tpu.memory_space<vmem>>, vector<8x32xf32>
    tpu.vector_store %arg9[%c0_49, %c0_50], %138 {strides = array<i32>} : memref<8x32xf32, #tpu.memory_space<vmem>>, vector<8x32xf32>,
    return
  }
  func.func @transform_0(%arg0: i32) -> (i32, i32) {
    %c0_i32 = arith.constant 0 : i32
    %c0_i32_0 = arith.constant 0 : i32
    return %arg0, %c0_i32 : i32, i32
  }
  func.func @transform_1(%arg0: i32) -> (i32, i32) {
    %c0_i32 = arith.constant 0 : i32
    %c0_i32_0 = arith.constant 0 : i32
    return %arg0, %c0_i32 : i32, i32
  }
  func.func @transform_2(%arg0: i32) -> (i32, i32) {
    %c0_i32 = arith.constant 0 : i32
    %c0_i32_0 = arith.constant 0 : i32
    %c0_i32_1 = arith.constant 0 : i32
    return %c0_i32, %c0_i32_0 : i32, i32
  }
  func.func @transform_3(%arg0: i32) -> (i32, i32) {
    %c0_i32 = arith.constant 0 : i32
    %c0_i32_0 = arith.constant 0 : i32
    %c0_i32_1 = arith.constant 0 : i32
    return %c0_i32, %c0_i32_0 : i32, i32
  }
  func.func @transform_4(%arg0: i32) -> (i32, i32) {
    %c0_i32 = arith.constant 0 : i32
    %c0_i32_0 = arith.constant 0 : i32
    %c0_i32_1 = arith.constant 0 : i32
    return %c0_i32, %c0_i32_0 : i32, i32
  }
  func.func @transform_5(%arg0: i32) -> (i32, i32) {
    %c0_i32 = arith.constant 0 : i32
    %c0_i32_0 = arith.constant 0 : i32
    %c0_i32_1 = arith.constant 0 : i32
    return %c0_i32, %c0_i32_0 : i32, i32
  }
  func.func @transform_6(%arg0: i32) -> (i32, i32) {
    %c0_i32 = arith.constant 0 : i32
    %c0_i32_0 = arith.constant 0 : i32
    %c0_i32_1 = arith.constant 0 : i32
    return %c0_i32, %c0_i32_0 : i32, i32
  }
  func.func @transform_7(%arg0: i32) -> (i32, i32) {
    %c0_i32 = arith.constant 0 : i32
    %c0_i32_0 = arith.constant 0 : i32
    %c0_i32_1 = arith.constant 0 : i32
    return %c0_i32, %c0_i32_0 : i32, i32
  }
  func.func @transform_8(%arg0: i32) -> (i32, i32) {
    %c0_i32 = arith.constant 0 : i32
    %c0_i32_0 = arith.constant 0 : i32
    return %arg0, %c0_i32 : i32, i32
  }
  func.func @transform_9(%arg0: i32) -> (i32, i32) {
    %c0_i32 = arith.constant 0 : i32
    %c0_i32_0 = arith.constant 0 : i32
    return %arg0, %c0_i32 : i32, i32
  }
}

</mosaic_0001>

<bundles_post_ra>
// kernel: tpu_custom_call.1
= control target key start
LH: loop header
LB: loop body
LE: loop exit
PB: predicated region body
PF: predicated region fallthrough
CT: control target
= control target key end

     0   :  { %s2569_s0 = inlined_call_operand.hbm [shape: f32[16,32], index: 0, kind: input, shape index: {}]   ;;  %s2570_s1 = inlined_call_operand.hbm [shape: f32[16,96], index: 1, kind: input, shape index: {}]   ;;  %s2571_s2 = inlined_call_operand.vmem [shape: f32[1,32], index: 2, kind: input, shape index: {}]   ;;  %s2572_s3 = inlined_call_operand.vmem [shape: f32[32,112], index: 3, kind: input, shape index: {}]   ;;  %s2573_s4 = inlined_call_operand.vmem [shape: f32[32,32], index: 4, kind: input, shape index: {}]   ;;  %s2574_s5 = inlined_call_operand.vmem [shape: f32[1,32], index: 5, kind: input, shape index: {}]   ;;  %s2575_s6 = inlined_call_operand.vmem [shape: f32[32,128], index: 6, kind: input, shape index: {}]   ;;  %s2576_s7 = inlined_call_operand.vmem [shape: f32[64,32], index: 7, kind: input, shape index: {}]   ;;  %s2577_s8 = inlined_call_operand.hbm [shape: f32[16,32], index: 8, kind: output, shape index: {0}]   ;;  %s2578_s9 = inlined_call_operand.hbm [shape: f32[16,32], index: 9, kind: output, shape index: {1}]  }
   0x1   :  { %2584 = sst [smem:[#allocation16_spill]] %s2569_s0 }
   0x2   :  { %15 = vsyncpa [#allocation3], 0 }
   0x3   :  { %17 = vsyncpa [#allocation3 + $0x1], 0 }
   0x4   :  { %18 = vsyncpa [#allocation6], 0 }
   0x5   :  { %20 = vsyncpa [#allocation6 + $0x1], 0 }
   0x6   :  { %21 = vsyncpa [#allocation4], 0 }
   0x7   :  { %23 = vsyncpa [#allocation4 + $0x1], 0 }
   0x8   :  { %24 = vsyncpa [#allocation9], 0 }
   0x9   :  { %26 = vsyncpa [#allocation9 + $0x1], 0  ;;  %s2155_s30 = smov 0   ;;  %s2157_s10 = smov 0  }
   0xa   :  { %s2159_s11 = smov 0   ;;  %s2161_s12 = smov 0  }
   0xb LB: > { %2585 = sst [smem:[#allocation14_spill]] %s2079_s11  ;;  %s2176_s13 = sadd.s32 4294967295, %s2083_s12   ;;  %s2083_s12 = sphi %s2161_s12, %s2607_s12   ;;  %s2079_s11 = sphi %s2159_s11, %s2604_s11   ;;  %s2075_s10 = sphi %s2157_s10, %s2606_s10   ;;  %s2071_s30 = sphi %s2155_s30, %s2605_s30  }
   0xc   : > { %s1626_s14 = sadd.s32 4294967294, %s2083_s12   ;;  %s2180_s15 = sadd.s32 1, %s2083_s12  }
   0xd   : > { %s39_s16 = sadd.s32 1, %s2079_s11  ;;  %s36_s17 = ssub.s32 %s2083_s12, %s2180_s15 }
   0xe   : > { %p46_p0 = scmp.ne.s32.totalorder %s2079_s11, %s2075_s10  ;;  %p37_p1 = scmp.eq.s32.totalorder %s36_s17, 0 }
   0xf   : > { %p47_p2 = scmp.eq.s32.totalorder %s2083_s12, 0  ;;  %p52_p3 = scmp.ne.s32.totalorder %s2075_s10, %s2071_s30 }
  0x10   : > { %p53_p4 = scmp.eq.s32.totalorder %s2176_s13, 0  ;;  %p228_p7 = scmp.eq.s32.totalorder %s2176_s13, 1 }
  0x11   : > { %s2192_s18 = scalar_select %p37_p1, %s2079_s11, %s39_s16  }
  0x12   : > { %p2194_p5 = por %p47_p2, %p46_p0  ;;  %p2198_p6 = por %p53_p4, %p52_p3 }
  0x13   : > { %2586 = sst [smem:[#allocation15_spill]] %s2192_s18  ;;  %p234_p8 = scmp.eq.s32.totalorder %s1626_s14, 1 }
  0x14   : > { %s2588_s20 = scalar_select %p2198_p6, 1, 0 }
  0x15   : > { %p1847_p10 = scmp.lt.s32.totalorder %s2083_s12, 2  ;;  %p2205_p11 = por %p228_p7, %p46_p0 }
  0x16   : > { %p2209_p12 = por %p234_p8, %p52_p3  ;;  %s2214_s23 = sand.u32 1, %s2079_s11  }
  0x17   : > { %s2589_s21 = scalar_select %p2205_p11, 1, 0 }
  0x18   : > { %s2590_s22 = scalar_select %p2209_p12, 1, 0 }
  0x19   : > { %s2580_s24 = sshll.u32 %s2083_s12, 7  ;;  %s2579_s25 = sshll.u32 %s2214_s23, 3 }
  0x1a   : > { %s2591_s0 = sld [smem:[#allocation16_spill]]  ;;  %s302_s29 = scalar_lea.vmem [#allocation2], %s2579_s25 }
  0x1b   : > { %s309_s14 = sshll.u32 %s302_s29, 4  ;;  %p2229_p13 = pnand %p1847_p10, %p2194_p5  ;;  %s2233_s14 = int_to_ptr.vmem [resolvable:$true] %s309_s14 }
  0x1c   : > { %s299_s17 = scalar_lea.sflag [#allocation3], %s2214_s23 }
  0x1d   : > { %p1923_p3 = pneg %p2229_p13 }
  0x20   : > { %s2223_s28 = scalar_lea.hbm %s2591_s0, %s2580_s24  ;;  %s1926_s29 = scalar_lea.hbm %s2591_s0, 256 }
  0x21   : > { %s1921_s26 = scalar_lea.hbm %s2223_s28, 128  ;;  %p1927_p5 = scmp.lt.u32.totalorder %s2223_s28, %s2591_s0 }
  0x22   : > { %p1922_p2 = scmp.ne.s32.totalorder %s2223_s28, %s1921_s26  ;;  %p1928_p8 = scmp.lt.u32.totalorder %s1926_s29, %s1921_s26 }
  0x23   : > { %p1930_p9 = scmp.lt.u32.totalorder %s1921_s26, %s2223_s28 }
  0x24   : > { %p1924_p4 = pnand %p1923_p3, %p1922_p2  ;;  %p1929_p10 = por %p1928_p8, %p1927_p5 }
  0x26   : > { %p1925_p7 = pneg %p1924_p4  ;;  %p1931_p0 = por %p1930_p9, %p1929_p10 }
  0x28   : > { %p1932_p1 = pnand %p1931_p0, %p1925_p7 }
  0x2a   : > { %1935 = shalt.err (!%p1932_p1)
}
  0x2b   : > { %s1936_s18 = scalar_lea.vmem %s2233_s14, 128  ;;  %s2085_s19 = smov [#allocation2]  }
  0x2c   : > { %p1937_p2 = scmp.ne.s32.totalorder %s2233_s14, %s1936_s18  ;;  %s1941_s27 = sshll.u32 %s2085_s19, 4  ;;  %s1942_s27 = int_to_ptr.vmem [resolvable:$false] %s1941_s27 }
  0x2d   : > { %s1943_s24 = scalar_lea.vmem %s1942_s27, 256  ;;  %p1944_p11 = scmp.lt.s32.totalorder %s2233_s14, %s1942_s27 }
  0x2e   : > { %p1939_p4 = pnand %p1937_p2, %p1923_p3  ;;  %p1945_p5 = scmp.lt.s32.totalorder %s1943_s24, %s1936_s18 }
  0x30   : > { %p1940_p12 = pneg %p1939_p4  ;;  %p1946_p8 = por %p1945_p5, %p1944_p11 }
  0x32   : > { %p1947_p9 = pnand %p1946_p8, %p1940_p12 }
  0x34   : > { %1950 = shalt.err (!%p1947_p9)
}
  0x35   : > { %1836 = dma.hbm_to_vmem [thread:$0]  (!%p2229_p13), %s2223_s28, 128, %s2233_s14, %s299_s17  }
  0x36   : > { %p2593_p0 = scmp.lt.s32.totalorder %s2083_s12, 3  ;;  %p2594_p1 = scmp.ge.s32.totalorder %s2083_s12, 1 }
  0x37   : > { %s2596_s18 = sshll.u32 %s2083_s12, 7  ;;  %s2597_s27 = sshll.u32 %s2214_s23, 3 }
  0x38   : > { %p2267_p7 = pnand %p2594_p1, %p2593_p0  ;;  %s2276_s19 = scalar_lea.hbm %s2570_s1, %s2596_s18 }
  0x39   : > { %s320_s24 = scalar_lea.vmem [#allocation5], %s2597_s27  ;;  %s317_s28 = scalar_lea.sflag [#allocation6], %s2214_s23 }
  0x3a   : > { %s2595_s25 = scalar_select %p2267_p7, 1, 0 }
  0x3b   : > { %s327_s0 = sshll.u32 %s320_s24, 4  ;;  %s1951_s14 = scalar_lea.hbm %s2276_s19, 128  ;;  %s328_s0 = int_to_ptr.vmem [resolvable:$true] %s327_s0 }
  0x3c   : > { %p1952_p11 = scmp.ne.s32.totalorder %s2276_s19, %s1951_s14  ;;  %s1956_s18 = scalar_lea.hbm %s2570_s1, 256 }
  0x3d   : > { %p1957_p2 = scmp.lt.u32.totalorder %s2276_s19, %s2570_s1  ;;  %p1958_p4 = scmp.lt.u32.totalorder %s1956_s18, %s1951_s14 }
  0x3e   : > { %p1954_p12 = pnand %p1952_p11, %p1923_p3  ;;  %p1960_p8 = scmp.lt.u32.totalorder %s1951_s14, %s2276_s19 }
  0x3f   : > { %p1959_p5 = por %p1958_p4, %p1957_p2 }
  0x40   : > { %p1955_p10 = pneg %p1954_p12 }
  0x41   : > { %p1961_p9 = por %p1960_p8, %p1959_p5 }
  0x43   : > { %p1962_p0 = pnand %p1961_p9, %p1955_p10 }
  0x45   : > { %1965 = shalt.err (!%p1962_p0)
}
  0x46   : > { %s1966_s23 = scalar_lea.vmem %s328_s0, 128  ;;  %s2086_s27 = smov [#allocation5]  }
  0x47   : > { %p1967_p1 = scmp.ne.s32.totalorder %s328_s0, %s1966_s23  ;;  %s1971_s11 = sshll.u32 %s2086_s27, 4  ;;  %s1972_s11 = int_to_ptr.vmem [resolvable:$false] %s1971_s11 }
  0x48   : > { %s1973_s24 = scalar_lea.vmem %s1972_s11, 256  ;;  %p1974_p6 = scmp.lt.s32.totalorder %s328_s0, %s1972_s11 }
  0x49   : > { %p1969_p11 = pnand %p1967_p1, %p1923_p3  ;;  %p1975_p7 = scmp.lt.s32.totalorder %s1973_s24, %s1966_s23 }
  0x4b   : > { %p1970_p12 = pneg %p1969_p11  ;;  %p1976_p2 = por %p1975_p7, %p1974_p6 }
  0x4d   : > { %p1977_p4 = pnand %p1976_p2, %p1970_p12 }
  0x4f   : > { %1980 = shalt.err (!%p1977_p4)
}
  0x50   : > { %1839 = dma.hbm_to_vmem [thread:$0]  (!%p2229_p13), %s2276_s19, 128, %s328_s0, %s317_s28  }
  0x51   : > { %p2598_p10 = scmp.ne.s32.totalorder %s2595_s25, 0 }
  0x52   : > { %s2303_s14 = sand.u32 (!%p2598_p10), 1, %s2075_s10   ;;  %p2599_p6 = scmp.ne.s32.totalorder (!%p2598_p10), %s2588_s20, 0 }
  0x53   : > { %336 = sbr.rel (%p2598_p10) target bundleno = 2512 (0x9d0), region = 52  ;;  %s2306_s17 = sshll.u32 (!%p2598_p10), %s2303_s14, 3 }
  0x54   : > { %s339_s18 = scalar_lea.sflag (!%p2598_p10), [#allocation3], %s2303_s14  ;;  %s342_s26 = scalar_lea.vmem (!%p2598_p10), [#allocation2], %s2306_s17 }
  0x5a   : > { %2054 = dma.done.wait (%p2599_p6), %s339_s18, 128  }
  0x5b   : > { %2056 = vsyncadd (%p2599_p6), %s339_s18, 4294967168  ;;  %s348_s0 = scalar_lea.sflag [#allocation6], %s2303_s14  ;;  %s351_s16 = scalar_lea.vmem [#allocation5], %s2306_s17 }
  0x5c   : > { %2058 = dma.done.wait (%p2599_p6), %s348_s0, 128  }
  0x5d   : > { %2060 = vsyncadd (%p2599_p6), %s348_s0, 4294967168  ;;  %v2320_v0 = vld [vmem:[%s342_s26] sm:$0xff]  ;;  %vm398_vm0 = vcmask 261120   ;;  %v417_v5 = vld [vmem:[%s2572_s3 + $0x10] sm:$0xff]  ;;  %v2087_v6 = vmov 0.0|0.0   ;;  %vm2088_vm1 = vmmov 0   ;;  %v528_v37 = vlaneseq }
  0x5e   : > { %v397_v1 = vmul.f32 %v2320_v0, %v2320_v0  ;;  %v415_v3 = vld [vmem:[%s2572_s3] sm:$0xff]  ;;  %v416_v4 = vld [vmem:[%s2572_s3 + $0x8] sm:$0xff]  ;;  %1795 = vmatprep.subr.bf16.mxu1 %v2087_v6  ;;  %v418_v8 = vld [vmem:[%s2572_s3 + $0x18] sm:$0xff]  ;;  %v2089_v9 = vmov 0.0   ;;  %s2090_s24 = smov 32   ;;  %s2091_s18 = smov 16  }
  0x5f   : > { %v1796_v7 = vpack.c.bf16 %v416_v4, %v415_v3  ;;  %1711 = vmatprep.mubr.msk.f32.mxu1 %vm2088_vm1, %v2089_v9  ;;  %1724 = vmatprep.subr.mxu0 %v2089_v9  ;;  %v1799_v10 = vpack.c.bf16 %v418_v8, %v417_v5  ;;  %v492_v11 = vld [vmem:[%s351_s16] sm:$0xff]  ;;  %s2092_s26 = smov 96   ;;  %v1638_v16 = vld [vmem:[%s2571_s2] ss:$0 sm:$0xff]  ;;  %s2093_s16 = smov 64   ;;  %vm534_vm2 = vcmask 64512  }
  0x60   : > { %v399_v2 = vsel %vm398_vm0, %v397_v1, 0.0  ;;  %1726 = vmatprep.mubr.msk.f32.mxu0 %vm2088_vm1, %v2089_v9  ;;  %495 = vrot.lane.b32.xlu1 %v492_v11, %s2090_s24  ;;  %s2094_s19 = smov 112   ;;  %s2095_s28 = smov 120   ;;  %v529_v38 = vshrl.u32 %v528_v37, 7  ;;  %v531_v39 = vand.u32 127, %v528_v37  ;;  %v1202_v37 = vld [vmem:[%s2573_s4] sm:$0xff] }
  0x61   : > { %400 = vadd.xlane.f32.xlu0 %v399_v2  ;;  %1797 = vmatpush3.bf16.msra.mxu1 %v1796_v7  ;;  %s2096_s29 = smov 88   ;;  %s2097_s23 = smov 104   ;;  %v2098_v41 = vmov -1e+09   ;;  %vm525_vm4 = vcmask 130048   ;;  %vm1200_vm5 = vcmask 195584  }
  0x62   : > { %1798 = vmatprep.subr.bf16.mxu1 %v2087_v6  ;;  %vm532_vm3 = vcmp.ge.s32.totalorder %v529_v38, %v531_v39  ;;  %s2099_s20 = smov 80   ;;  %s2100_s27 = smov 72   ;;  %v1203_v38 = vld [vmem:[%s2573_s4 + $0x8] sm:$0xff]  ;;  %vm1393_vm6 = vcmask 523264  }
  0x63   : > { %v533_v42 = vsel %vm532_vm3, 0.0, %v2098_v41  ;;  %v1802_v39 = vpack.c.bf16 %v1203_v38, %v1202_v37  ;;  %v1205_v41 = vld [vmem:[%s2573_s4 + $0x18] sm:$0xff]  ;;  %p2600_p3 = scmp.ne.s32.totalorder %s2589_s21, 0 }
  0x64   : > { %504 = vrot.lane.b32.xlu1 %v492_v11, %s2092_s26 }
  0x65   : > { %1800 = vmatpush3.bf16.msra.mxu1 %v1799_v10 }
  0x66   : > { %1714 = vmatprep.subr.mxu1 %v2089_v9 }
  0x77   : > { %508 = vrot.lane.b32.xlu0 %v492_v11, %s2091_s18 }
  0xd2   : > { %v496_v23 = vpop.permute.xlu1 %495 }
  0xd6   : > { %v505_v25 = vpop.permute.xlu1 %504 }
  0xee   : > { %v401_v12 = vpop.xlane.xlu0 %400 }
  0xef   : > { %v403_v13 = vmul.f32 0.03125, %v401_v12 }
  0xf1   : > { %v404_v14 = vadd.f32 1e-05, %v403_v13 }
  0xf2   : > { %v509_v19 = vpop.permute.xlu0 %508 }
  0xf3   : > { %1897 = vrsqrt.f32 %v404_v14 }
  0xfd   : > { %v1898_v15 = vpop.eup %1897 }
  0xfe   : > { %v406_v17 = vmul.f32 %v1898_v15, %v2320_v0 }
 0x100   : > { %v414_v18 = vmul.f32 %v1638_v16, %v406_v17 }
 0x102   : > { %1712 = vmatmul.mubr.msk.f32.vlgmr.msra.gmra.mrb[0].mxu1 %vm398_vm0, %v414_v18 }
 0x103   : > { %1716 = vmatprep.mubr.msk.f32.mxu1 %vm2088_vm1, %v2089_v9 }
 0x1d5   : > { %v2354_v20 = vpop.f32.mrb[0].mxu1 }
 0x1d6   : > { %v511_v21 = vmul.f32 %v509_v19, %v2354_v20  ;;  %v1713_v22 = vpop.f32.mrb[1].mxu1  ;;  %v498_v24 = vmul.f32 %v496_v23, %v2354_v20  ;;  %v507_v26 = vmul.f32 %v505_v25, %v2354_v20  ;;  %v493_v29 = vmul.f32 %v492_v11, %v2354_v20 }
 0x1d8   : > { %513 = vrot.lane.b32.xlu1 %v511_v21, %s2093_s16 }
 0x1dc   : > { %500 = vrot.lane.b32.xlu1 %v498_v24, %s2093_s16 }
 0x24a   : > { %v514_v27 = vpop.permute.xlu1 %513 }
 0x24b   : > { %v516_v28 = vadd.f32 %v514_v27, %v507_v26 }
 0x24d   : > { %518 = vrot.lane.b32.xlu1 %v516_v28, %s2092_s26 }
 0x24e   : > { %v501_v30 = vpop.permute.xlu1 %500 }
 0x24f   : > { %v503_v31 = vadd.f32 %v501_v30, %v493_v29 }
 0x251   : > { %859 = vrot.lane.b32.xlu0 %v503_v31, %s2094_s19  ;;  %699 = vrot.lane.b32.xlu1 %v503_v31, %s2095_s28 }
 0x255   : > { %861 = vrot.lane.b32.xlu1 %v516_v28, %s2096_s29 }
 0x259   : > { %1026 = vrot.lane.b32.xlu1 %v503_v31, %s2097_s23  ;;  %s1475_s23 = scalar_lea.sflag [#allocation9], %s2303_s14 }
 0x2bf   : > { %v2363_v32 = vpop.permute.xlu1 %518 }
 0x2c0   : > { %1715 = vmatpush3.xpose.msk.msra.mxu1 %vm534_vm2, %v2363_v32  ;;  %1725 = vmatpush3.xpose.msk.msra.mxu0 %vm534_vm2, %v2363_v32 }
 0x2c1   : > { %1734 = vmatprep.subr.mxu0 %v2089_v9  ;;  %1719 = vmatprep.subr.mxu1 %v2089_v9 }
 0x2c3   : > { %1717 = vmatmul.mubr.msk.f32.vlgmr.msra.gmra.mrb[2].mxu1 %vm534_vm2, %v503_v31  ;;  %v700_v33 = vpop.permute.xlu1 %699  ;;  %v860_v35 = vpop.permute.xlu0 %859 }
 0x2c4   : > { %1727 = vmatmul.mubr.msk.f32.vlgmr.msra.gmra.mrb[0].mxu0 %vm534_vm2, %v700_v33  ;;  %1721 = vmatprep.mubr.msk.f32.mxu1 %vm2088_vm1, %v2089_v9 }
 0x2c5   : > { %1736 = vmatprep.mubr.msk.f32.mxu0 %vm2088_vm1, %v2089_v9 }
 0x2c7   : > { %v862_v34 = vpop.permute.xlu1 %861 }
 0x2c8   : > { %1735 = vmatpush3.xpose.msk.msra.mxu0 %vm534_vm2, %v862_v34 }
 0x2c9   : > { %1744 = vmatprep.subr.mxu0 %v2089_v9 }
 0x2cb   : > { %1737 = vmatmul.mubr.msk.f32.vlgmr.msra.gmra.mrb[2].mxu0 %vm534_vm2, %v860_v35  ;;  %v1027_v36 = vpop.permute.xlu1 %1026 }
 0x2cc   : > { %1745 = vmatpush3.xpose.msk.msra.mxu0 %vm534_vm2, %v862_v34  ;;  %1746 = vmatprep.mubr.msk.f32.mxu0 %vm2088_vm1, %v2089_v9 }
 0x2cd   : > { %1801 = vmatprep.subr.bf16.mxu0 %v2087_v6 }
 0x2cf   : > { %1747 = vmatmul.mubr.msk.f32.vlgmr.msra.gmra.mrb[4].mxu0 %vm534_vm2, %v1027_v36 }
 0x2d0   : > { %1762 = vmatprep.mubr.msk.f32.mxu0 %vm2088_vm1, %v2089_v9  ;;  %1803 = vmatpush3.bf16.msra.mxu0 %v1802_v39 }
 0x2d1   : > { %1804 = vmatprep.subr.bf16.mxu0 %v2087_v6 }
 0x396   : > { %v606_v40 = vpop.f32.mrb[2].mxu1 }
 0x397   : > { %v610_v43 = vmul.f32 0.35355338, %v606_v40  ;;  %v1718_v44 = vpop.f32.mrb[3].mxu1  ;;  %v769_v45 = vpop.f32.mrb[0].mxu0  ;;  %v1204_v40 = vld [vmem:[%s2573_s4 + $0x10] sm:$0xff] }
 0x398   : > { %v773_v46 = vmul.f32 0.35355338, %v769_v45  ;;  %v1728_v47 = vpop.f32.mrb[1].mxu0 }
 0x399   : > { %v611_v48 = vadd.f32 %v610_v43, %v533_v42 }
 0x39a   : > { %v774_v49 = vadd.f32 %v773_v46, %v533_v42 }
 0x39b   : > { %v612_v50 = vsel %vm534_vm2, %v611_v48, -inf }
 0x39c   : > { %613 = vmax.xlane.f32.xlu0 %v612_v50  ;;  %v775_v51 = vsel %vm534_vm2, %v774_v49, -inf }
 0x39d   : > { %776 = vmax.xlane.f32.xlu1 %v775_v51 }
 0x39e   : > { %v933_v52 = vpop.f32.mrb[2].mxu0 }
 0x39f   : > { %v937_v53 = vmul.f32 0.35355338, %v933_v52  ;;  %v1738_v54 = vpop.f32.mrb[3].mxu0 }
 0x3a1   : > { %v938_v55 = vadd.f32 %v937_v53, %v533_v42 }
 0x3a2   : > { %v1096_v56 = vpop.f32.mrb[4].mxu0 }
 0x3a3   : > { %v1100_v57 = vmul.f32 0.35355338, %v1096_v56  ;;  %v1748_v58 = vpop.f32.mrb[5].mxu0  ;;  %v939_v59 = vsel %vm534_vm2, %v938_v55, -inf }
 0x3a4   : > { %940 = vmax.xlane.f32.xlu0 %v939_v59 }
 0x3a5   : > { %v1101_v60 = vadd.f32 %v1100_v57, %v533_v42  ;;  %v1805_v42 = vpack.c.bf16 %v1205_v41, %v1204_v40 }
 0x3a7   : > { %v1102_v61 = vsel %vm534_vm2, %v1101_v60, -inf  ;;  %1806 = vmatpush3.bf16.msra.mxu0 %v1805_v42 }
 0x3a8   : > { %1103 = vmax.xlane.f32.xlu0 %v1102_v61  ;;  %1813 = vmatprep.subr.bf16.mxu0 %v2087_v6 }
 0x429   : > { %v614_v62 = vpop.xlane.xlu0 %613 }
 0x42a   : > { %v615_v63 = vsub.f32 %v611_v48, %v614_v62  ;;  %v777_v1 = vpop.xlane.xlu1 %776  ;;  %v1296_v62 = vld [vmem:[%s2575_s6] sm:$0xff] }
 0x42b   : > { %v778_v2 = vsub.f32 %v774_v49, %v777_v1  ;;  %v1299_v1 = vld [vmem:[%s2575_s6 + $0x18] sm:$0xff] }
 0x42c   : > { %v616_v3 = vmul.f32 1.442695, %v615_v63  ;;  %v1297_v63 = vld [vmem:[%s2575_s6 + $0x8] sm:$0xff] }
 0x42d   : > { %v779_v4 = vmul.f32 1.442695, %v778_v2 }
 0x42e   : > { %1899 = vpow2.f32 %v616_v3 }
 0x42f   : > { %1901 = vpow2.f32 %v779_v4 }
 0x431   : > { %v941_v5 = vpop.xlane.xlu0 %940 }
 0x432   : > { %v942_v7 = vsub.f32 %v938_v55, %v941_v5 }
 0x434   : > { %v943_v8 = vmul.f32 1.442695, %v942_v7 }
 0x435   : > { %v1104_v10 = vpop.xlane.xlu0 %1103 }
 0x436   : > { %1903 = vpow2.f32 %v943_v8  ;;  %v1105_v11 = vsub.f32 %v1101_v60, %v1104_v10  ;;  %v1653_v8 = vld [vmem:[%s2574_s5] ss:$0 sm:$0xff] }
 0x438   : > { %v1900_v12 = vpop.eup %1899  ;;  %v1106_v13 = vmul.f32 1.442695, %v1105_v11 }
 0x439   : > { %v1902_v14 = vpop.eup %1901  ;;  %v618_v15 = vsel %vm534_vm2, %v1900_v12, 0.0 }
 0x43a   : > { %1905 = vpow2.f32 %v1106_v13  ;;  %619 = vadd.xlane.f32.xlu1 %v618_v15  ;;  %v781_v16 = vsel %vm534_vm2, %v1902_v14, 0.0  ;;  %v1386_v13 = vld [vmem:[%s2576_s7 + $0x8] sm:$0xff] }
 0x43b   : > { %782 = vadd.xlane.f32.xlu0 %v781_v16  ;;  %v1388_v16 = vld [vmem:[%s2576_s7 + $0x18] sm:$0xff] }
 0x440   : > { %v1904_v17 = vpop.eup %1903 }
 0x441   : > { %v945_v18 = vsel %vm534_vm2, %v1904_v17, 0.0 }
 0x442   : > { %946 = vadd.xlane.f32.xlu1 %v945_v18  ;;  %v1389_v18 = vld [vmem:[%s2576_s7 + $0x20] sm:$0xff] }
 0x444   : > { %v1906_v19 = vpop.eup %1905 }
 0x445   : > { %v1108_v21 = vsel %vm534_vm2, %v1906_v19, 0.0 }
 0x446   : > { %1109 = vadd.xlane.f32.xlu0 %v1108_v21 }
 0x453   : > { %623 = vrot.lane.b32.xlu1 %v2354_v20, %s2099_s20  ;;  %s2101_s20 = smov 8  }
 0x45c   : > { %950 = vrot.lane.b32.xlu0 %v2354_v20, %s2100_s27  ;;  %s2102_s27 = smov 24  }
 0x4c7   : > { %v620_v22 = vpop.xlane.xlu1 %619 }
 0x4c8   : > { %1907 = vrcp.f32 %v620_v22  ;;  %v783_v23 = vpop.xlane.xlu0 %782  ;;  %v1391_v22 = vld [vmem:[%s2576_s7 + $0x30] sm:$0xff] }
 0x4c9   : > { %1909 = vrcp.f32 %v783_v23  ;;  %v1392_v23 = vld [vmem:[%s2576_s7 + $0x38] sm:$0xff] }
 0x4cf   : > { %v947_v24 = vpop.xlane.xlu1 %946 }
 0x4d0   : > { %1911 = vrcp.f32 %v947_v24  ;;  %v1823_v24 = vpack.c.bf16 %v1392_v23, %v1391_v22 }
 0x4d2   : > { %v1908_v25 = vpop.eup %1907 }
 0x4d3   : > { %v622_v26 = vmul.f32 %v1908_v25, %v1900_v12  ;;  %v1110_v27 = vpop.xlane.xlu0 %1109  ;;  %v624_v28 = vpop.permute.xlu1 %623  ;;  %v1385_v12 = vld [vmem:[%s2576_s7] sm:$0xff] }
 0x4d4   : > { %v1910_v29 = vpop.eup %1909  ;;  %1913 = vrcp.f32 %v1110_v27  ;;  %1720 = vmatpush3.msra.mxu1 %v624_v28  ;;  %v1814_v15 = vpack.c.bf16 %v1386_v13, %v1385_v12 }
 0x4d5   : > { %1722 = vmatmul.mubr.msk.f32.vlgmr.msra.gmra.mrb[4].mxu1 %vm534_vm2, %v622_v26  ;;  %1729 = vmatprep.subr.mxu1 %v2089_v9  ;;  %v785_v30 = vmul.f32 %v1910_v29, %v1902_v14  ;;  %v1387_v14 = vld [vmem:[%s2576_s7 + $0x10] sm:$0xff] }
 0x4d6   : > { %1730 = vmatpush3.msra.mxu1 %v624_v28  ;;  %1731 = vmatprep.mubr.msk.f32.mxu1 %vm2088_vm1, %v2089_v9 }
 0x4d7   : > { %v951_v31 = vpop.permute.xlu0 %950  ;;  %1739 = vmatprep.subr.mxu1 %v2089_v9 }
 0x4d9   : > { %1732 = vmatmul.mubr.msk.f32.vlgmr.msra.gmra.mrb[6].mxu1 %vm534_vm2, %v785_v30 }
 0x4da   : > { %v1912_v33 = vpop.eup %1911  ;;  %1740 = vmatpush3.msra.mxu1 %v951_v31  ;;  %1741 = vmatprep.mubr.msk.f32.mxu1 %vm2088_vm1, %v2089_v9 }
 0x4db   : > { %v949_v34 = vmul.f32 %v1912_v33, %v1904_v17  ;;  %1749 = vmatprep.subr.mxu1 %v2089_v9  ;;  %v1817_v17 = vpack.c.bf16 %v1388_v16, %v1387_v14 }
 0x4dd   : > { %1742 = vmatmul.mubr.msk.f32.vlgmr.msra.gmra.mrb[8].mxu1 %vm534_vm2, %v949_v34 }
 0x4de   : > { %v1914_v35 = vpop.eup %1913  ;;  %1750 = vmatpush3.msra.mxu1 %v951_v31  ;;  %1751 = vmatprep.mubr.msk.f32.mxu1 %vm2088_vm1, %v2089_v9 }
 0x4df   : > { %v1112_v36 = vmul.f32 %v1914_v35, %v1906_v19  ;;  %1807 = vmatprep.subr.bf16.mxu1 %v2087_v6  ;;  %v1390_v19 = vld [vmem:[%s2576_s7 + $0x28] sm:$0xff] }
 0x4e0   : > { %v1820_v21 = vpack.c.bf16 %v1390_v19, %v1389_v18 }
 0x4e1   : > { %1752 = vmatmul.mubr.msk.f32.vlgmr.msra.gmra.mrb[10].mxu1 %vm534_vm2, %v1112_v36 }
 0x4e2   : > { %1773 = vmatprep.mubr.msk.f32.mxu1 %vm2088_vm1, %v2089_v9 }
 0x5a8   : > { %v695_v43 = vpop.f32.mrb[4].mxu1 }
 0x5a9   : > { %v1723_v44 = vpop.f32.mrb[5].mxu1 }
 0x5ac   : > { %v855_v45 = vpop.f32.mrb[6].mxu1 }
 0x5ad   : > { %1187 = vrot.lane.b32.xlu1 %v855_v45, %s2101_s20  ;;  %v1733_v46 = vpop.f32.mrb[7].mxu1 }
 0x5b0   : > { %v1022_v47 = vpop.f32.mrb[8].mxu1 }
 0x5b1   : > { %1191 = vrot.lane.b32.xlu1 %v1022_v47, %s2091_s18  ;;  %v1743_v48 = vpop.f32.mrb[9].mxu1 }
 0x5b4   : > { %v1182_v49 = vpop.f32.mrb[10].mxu1 }
 0x5b5   : > { %1195 = vrot.lane.b32.xlu0 %v1182_v49, %s2102_s27  ;;  %v1753_v50 = vpop.f32.mrb[11].mxu1  ;;  %s2103_s27 = smov [#allocation8]  }
 0x5b6   : > { %s1985_s18 = sshll.u32 %s2103_s27, 4  ;;  %s1986_s18 = int_to_ptr.vmem [resolvable:$false] %s1985_s18 }
 0x5b7   : > { %s1987_s11 = scalar_lea.vmem %s1986_s18, 256 }
 0x61f   : > { %v1188_v51 = vpop.permute.xlu1 %1187 }
 0x620   : > { %v1198_v53 = vsel %vm534_vm2, %v695_v43, %v1188_v51 }
 0x623   : > { %v1192_v52 = vpop.permute.xlu1 %1191 }
 0x624   : > { %v1199_v54 = vsel %vm525_vm4, %v1198_v53, %v1192_v52 }
 0x627   : > { %v1196_v55 = vpop.permute.xlu0 %1195 }
 0x628   : > { %v1201_v56 = vsel %vm1200_vm5, %v1199_v54, %v1196_v55 }
 0x629   : > { %1763 = vmatmul.mubr.msk.f32.vlgmr.msra.gmra.mrb[6].mxu0 %vm398_vm0, %v1201_v56 }
 0x62a   : > { %1792 = vmatprep.mubr.msk.f32.mxu0 %vm2088_vm1, %v2089_v9  ;;  %v1808_v9 = vpack.c.bf16 %v1297_v63, %v1296_v62  ;;  %1815 = vmatpush3.bf16.msra.mxu0 %v1814_v15 }
 0x62b   : > { %1816 = vmatprep.subr.bf16.mxu0 %v2087_v6 }
 0x62c   : > { %1809 = vmatpush3.bf16.msra.mxu1 %v1808_v9 }
 0x62d   : > { %1810 = vmatprep.subr.bf16.mxu1 %v2087_v6 }
 0x62e   : > { %1818 = vmatpush3.bf16.msra.mxu0 %v1817_v17 }
 0x62f   : > { %1819 = vmatprep.subr.bf16.mxu0 %v2087_v6 }
 0x632   : > { %1821 = vmatpush3.bf16.msra.mxu0 %v1820_v21 }
 0x633   : > { %1822 = vmatprep.subr.bf16.mxu0 %v2087_v6 }
 0x636   : > { %1824 = vmatpush3.bf16.msra.mxu0 %v1823_v24 }
 0x6fc   : > { %v1275_v57 = vpop.f32.mrb[6].mxu0 }
 0x6fd   : > { %v2434_v58 = vadd.f32 %v1275_v57, %v2320_v0  ;;  %v1764_v59 = vpop.f32.mrb[7].mxu0  ;;  %v1298_v0 = vld [vmem:[%s2575_s6 + $0x10] sm:$0xff] }
 0x6fe   : > { %v1811_v2 = vpack.c.bf16 %v1299_v1, %v1298_v0 }
 0x6ff   : > { %v1280_v60 = vmul.f32 %v2434_v58, %v2434_v58 }
 0x700   : > { %1812 = vmatpush3.bf16.msra.mxu1 %v1811_v2 }
 0x701   : > { %v1281_v61 = vsel %vm398_vm0, %v1280_v60, 0.0 }
 0x702   : > { %1282 = vadd.xlane.f32.xlu1 %v1281_v61 }
 0x78f   : > { %v1283_v3 = vpop.xlane.xlu1 %1282 }
 0x790   : > { %v1284_v4 = vmul.f32 0.03125, %v1283_v3 }
 0x792   : > { %v1285_v5 = vadd.f32 1e-05, %v1284_v4 }
 0x794   : > { %1915 = vrsqrt.f32 %v1285_v5 }
 0x79e   : > { %v1916_v7 = vpop.eup %1915 }
 0x79f   : > { %v1287_v10 = vmul.f32 %v1916_v7, %v2434_v58 }
 0x7a1   : > { %v1295_v11 = vmul.f32 %v1653_v8, %v1287_v10 }
 0x7a3   : > { %1774 = vmatmul.mubr.msk.f32.vlgmr.msra.gmra.mrb[12].mxu1 %vm398_vm0, %v1295_v11 }
 0x876   : > { %v1369_v25 = vpop.f32.mrb[12].mxu1 }
 0x877   : > { %1381 = vrot.lane.b32.xlu0 %v1369_v25, %s2093_s16  ;;  %v1775_v26 = vpop.f32.mrb[13].mxu1  ;;  %v1655_v27 = vmul.f32 -1.442695, %v1369_v25  ;;  %s1659_s16 = sshll.u32 %s2176_s13, 7 }
 0x878   : > { %s2497_s28 = scalar_lea.hbm %s2578_s9, %s1659_s16 }
 0x879   : > { %1917 = vpow2.f32 %v1655_v27 }
 0x87b   : > { %522 = vrot.lane.b32.xlu0 %v2354_v20, %s2092_s26  ;;  %s395_s26 = scalar_lea.vmem [#allocation8], %s2306_s17 }
 0x87c   : > { %s1501_s29 = sshll.u32 %s395_s26, 4  ;;  %s1502_s29 = int_to_ptr.vmem [resolvable:$true] %s1501_s29 }
 0x87d   : > { %s1981_s20 = scalar_lea.vmem %s1502_s29, 128  ;;  %p1988_p8 = scmp.lt.s32.totalorder %s1502_s29, %s1986_s18 }
 0x87e   : > { %p1982_p13 = scmp.ne.s32.totalorder %s1502_s29, %s1981_s20  ;;  %p1989_p9 = scmp.lt.s32.totalorder %s1987_s11, %s1981_s20 }
 0x880   : > { %p1983_p7 = pnand %p1982_p13, %p2600_p3  ;;  %p1990_p0 = por %p1989_p9, %p1988_p8 }
 0x882   : > { %p1984_p5 = pneg %p1983_p7 }
 0x883   : > { %v1918_v28 = vpop.eup %1917 }
 0x884   : > { %v1376_v29 = vadd.f32 1.0, %v1918_v28  ;;  %p1991_p1 = pnand %p1990_p0, %p1984_p5 }
 0x886   : > { %1919 = vrcp.f32 %v1376_v29 }
 0x890   : > { %v1920_v30 = vpop.eup %1919 }
 0x891   : > { %v1379_v31 = vmul.f32 %v1920_v30, %v1369_v25 }
 0x8e9   : > { %v1382_v6 = vpop.permute.xlu0 %1381 }
 0x8ea   : > { %v1384_v33 = vmul.f32 %v1382_v6, %v1379_v31 }
 0x8ec   : > { %1793 = vmatmul.mubr.msk.f32.vlgmr.msra.gmra.mrb[8].mxu0 %vm1393_vm6, %v1384_v33 }
 0x8ed   : > { %v523_v34 = vpop.permute.xlu0 %522 }
 0x8ee   : > { %v526_v35 = vsel %vm525_vm4, %v2363_v32, %v523_v34 }
 0x8ef   : > { %527 = vst.msk [vmem:[%s395_s26] sm:$0xff] %vm398_vm0, %v526_v35 }
 0x8f0   : > { %1994 = shalt.err (!%p1991_p1)
}
 0x8f1   : > { %s1995_s24 = scalar_lea.hbm %s2497_s28, 128  ;;  %s1999_s25 = scalar_lea.hbm %s2578_s9, 256 }
 0x8f2   : > { %p1996_p11 = scmp.ne.s32.totalorder %s2497_s28, %s1995_s24  ;;  %p2000_p4 = scmp.lt.u32.totalorder %s2497_s28, %s2578_s9 }
 0x8f3   : > { %p2001_p10 = scmp.lt.u32.totalorder %s1999_s25, %s1995_s24  ;;  %p2003_p13 = scmp.lt.u32.totalorder %s1995_s24, %s2497_s28 }
 0x8f4   : > { %p1997_p12 = pnand %p1996_p11, %p2600_p3 }
 0x8f5   : > { %p2002_p6 = por %p2001_p10, %p2000_p4 }
 0x8f6   : > { %p1998_p2 = pneg %p1997_p12 }
 0x8f7   : > { %p2004_p7 = por %p2003_p13, %p2002_p6 }
 0x8f9   : > { %p2005_p5 = pnand %p2004_p7, %p1998_p2 }
 0x8fb   : > { %2008 = shalt.err (!%p2005_p5)
}
 0x8fc   : > { %1830 = dma.vmem_to_hbm [thread:$0]  (%p2600_p3), %s1502_s29, 128, %s2497_s28, %s1475_s23  }
 0x8fd   : > { %s388_s20 = scalar_lea.vmem [#allocation7], %s2306_s17  ;;  %s2524_s0 = scalar_lea.hbm %s2577_s8, %s1659_s16 }
 0x8fe   : > { %s1488_s18 = sshll.u32 %s388_s20, 4  ;;  %s1470_s28 = scalar_lea.sflag [#allocation4], %s2303_s14  ;;  %s2526_s18 = int_to_ptr.vmem [resolvable:$true] %s1488_s18 }
 0x8ff   : > { %s2009_s17 = scalar_lea.vmem %s2526_s18, 128  ;;  %s2104_s29 = smov [#allocation7]  }
 0x900   : > { %p2010_p8 = scmp.ne.s32.totalorder %s2526_s18, %s2009_s17  ;;  %s2013_s13 = sshll.u32 %s2104_s29, 4  ;;  %s2014_s13 = int_to_ptr.vmem [resolvable:$false] %s2013_s13 }
 0x901   : > { %s2015_s23 = scalar_lea.vmem %s2014_s13, 256  ;;  %p2016_p1 = scmp.lt.s32.totalorder %s2526_s18, %s2014_s13 }
 0x902   : > { %p2011_p9 = pnand %p2010_p8, %p2600_p3  ;;  %p2017_p11 = scmp.lt.s32.totalorder %s2015_s23, %s2009_s17 }
 0x904   : > { %p2012_p0 = pneg %p2011_p9  ;;  %p2018_p12 = por %p2017_p11, %p2016_p1 }
 0x906   : > { %p2019_p2 = pnand %p2018_p12, %p2012_p0 }
 0x9bf   : > { %v1463_v20 = vpop.f32.mrb[8].mxu0 }
 0x9c0   : > { %v1467_v32 = vadd.f32 %v1463_v20, %v2434_v58  ;;  %v1794_v36 = vpop.f32.mrb[9].mxu0 }
 0x9c2   : > { %1468 = vst.msk [vmem:[%s388_s20] sm:$0xff] %vm398_vm0, %v1467_v32 }
 0x9c3   : > { %2022 = shalt.err (!%p2019_p2)
}
 0x9c4   : > { %s2023_s14 = scalar_lea.hbm %s2524_s0, 128  ;;  %s2027_s25 = scalar_lea.hbm %s2577_s8, 256 }
 0x9c5   : > { %p2024_p4 = scmp.ne.s32.totalorder %s2524_s0, %s2023_s14  ;;  %p2028_p13 = scmp.lt.u32.totalorder %s2524_s0, %s2577_s8 }
 0x9c6   : > { %p2029_p7 = scmp.lt.u32.totalorder %s2027_s25, %s2023_s14  ;;  %p2031_p8 = scmp.lt.u32.totalorder %s2023_s14, %s2524_s0 }
 0x9c7   : > { %p2025_p10 = pnand %p2024_p4, %p2600_p3 }
 0x9c8   : > { %p2030_p5 = por %p2029_p7, %p2028_p13 }
 0x9c9   : > { %p2026_p6 = pneg %p2025_p10 }
 0x9ca   : > { %p2032_p9 = por %p2031_p8, %p2030_p5 }
 0x9cc   : > { %p2033_p0 = pnand %p2032_p9, %p2026_p6 }
 0x9ce   : > { %2036 = shalt.err (!%p2033_p0)
}
 0x9cf   : > { %1829 = dma.vmem_to_hbm [thread:$0]  (%p2600_p3), %s2526_s18, 128, %s2524_s0, %s1470_s28  }
 0x9d0 PF: > { %s1513_s20 = sand.u32 1, %s2071_s30   ;;  %p2601_p1 = scmp.ne.s32.totalorder %s2590_s22, 0 }
 0x9d1   : > { %p2602_p11 = scmp.ge.s32.totalorder %s2083_s12, 2  ;;  %s1514_s11 = scalar_lea.sflag [#allocation4], %s1513_s20 }
 0x9d3   : > { %p1841_p12 = pnand %p2602_p11, %p2601_p1 }
 0x9d5   : > { %2062 = dma.done.wait (!%p1841_p12), %s1514_s11, 128  }
 0x9d6   : > { %2064 = vsyncadd (!%p1841_p12), %s1514_s11, 4294967168  ;;  %s1523_s24 = scalar_lea.sflag [#allocation9], %s1513_s20 }
 0x9d7   : > { %2066 = dma.done.wait (!%p1841_p12), %s1523_s24, 128  }
 0x9d8   : > { %2068 = vsyncadd (!%p1841_p12), %s1523_s24, 4294967168  ;;  %s2603_s21 = sld [smem:[#allocation14_spill]]  ;;  %s2604_s11 = sld [smem:[#allocation15_spill]] }
 0x9d9   : > { %p29_p3 = scmp.ge.s32.totalorder %s2180_s15, 4   ;;  %s2605_s30 = smov %s2075_s10 }
 0x9da   : > { %s2607_s12 = smov %s2180_s15 }
 0x9db   :  { %31 = sbr.rel (!%p29_p3) target bundleno = 11 (0xb), region = 127 }
 0x9de   : > { %s2606_s10 = smov %s2603_s21 }
 0x9e2   :  { %1528 = vsyncpa [#allocation3], 1 }
 0x9e3   :  { %1530 = vsyncpa [#allocation3 + $0x1], 1 }
 0x9e4   :  { %1531 = vsyncpa [#allocation6], 1 }
 0x9e5   :  { %1533 = vsyncpa [#allocation6 + $0x1], 1 }
 0x9e6   :  { %1534 = vsyncpa [#allocation4], 1 }
 0x9e7   :  { %1536 = vsyncpa [#allocation4 + $0x1], 1 }
 0x9e8   :  { %1537 = vsyncpa [#allocation9], 1 }
 0x9e9   :  { %1539 = vsyncpa [#allocation9 + $0x1], 1 }

</bundles_post_ra>
